<compile_context>
chip_gen: v7x
topology: tpu7x:2x2x1
jax: 0.10.0
libtpu: 0.0.40
codegen_flags: <defaults>
</compile_context>

<pallas_src>
import jax
import jax.numpy as jnp
import numpy as np
from jax.experimental import pallas as pl
from jax.experimental.pallas import tpu as pltpu

_EARTH_RADIUS_KM = 6371.0
_LANES = 128
_SUBLANES = 8


def _round_up(x, m):
    return ((x + m - 1) // m) * m


def _haversine_partial_kernel(coords_ref, psum_ref):
    """One (4, BLK, 128) tile -> (1, 8, 128) partial sum of squared distances."""
    deg2rad = jnp.float32(np.pi / 180.0)

    lat1 = coords_ref[0] * deg2rad
    lon1 = coords_ref[1] * deg2rad
    lat2 = coords_ref[2] * deg2rad
    lon2 = coords_ref[3] * deg2rad

    # 3-cos form (half-angle + product-to-sum), exact in real arithmetic:
    #   a = sin^2(dlat/2) + cos(lat1)cos(lat2) sin^2(dlon/2)
    #     = 0.5*(1 - cos(dlat)) + 0.25*(cos(dlat) + cos(lat1+lat2))*(1 - cos(dlon))
    cos_dlat = jnp.cos(lat2 - lat1)
    cos_dlon = jnp.cos(lon2 - lon1)
    cos_lsum = jnp.cos(lat1 + lat2)
    one = jnp.float32(1.0)
    a = (jnp.float32(0.5) * (one - cos_dlat)
         + jnp.float32(0.25) * (cos_dlat + cos_lsum) * (one - cos_dlon))
    # Clamp so sqrt never sees a negative / >1 value from f32 rounding.
    a = jnp.clip(a, 0.0, 1.0)

    # c = 2*asin(sqrt(a)) == atan2(2*sqrt(a*(1-a)), 1-2a): one sqrt instead of two.
    c = jnp.arctan2(
        jnp.float32(2.0) * jnp.sqrt(a * (one - a)),
        one - jnp.float32(2.0) * a,
    )
    d = jnp.float32(_EARTH_RADIUS_KM) * c
    d2 = d * d  # zero-padded rows are exactly 0 here

    # Reduce the tile to one (8, 128) vreg-shaped partial sum.  The reshape
    # only groups native (8, 128) tiles and the sum is over the major axis,
    # so this is pure VPU adds (no XLU work in the hot loop).
    block_rows = d2.shape[0]
    partial = jnp.sum(d2.reshape(block_rows // _SUBLANES, _SUBLANES, _LANES), axis=0)
    psum_ref[0, :, :] = partial


def _haversine_mse_ref(output, target):
    """Pure-JAX reference matching the PyTorch module exactly."""
    deg2rad = jnp.float32(np.pi / 180.0)
    lat1, lon1 = output[:, 0] * deg2rad, output[:, 1] * deg2rad
    lat2, lon2 = target[:, 0] * deg2rad, target[:, 1] * deg2rad
    dlon = lon2 - lon1
    dlat = lat2 - lat1
    a = jnp.sin(dlat / 2) ** 2 + jnp.cos(lat1) * jnp.cos(lat2) * jnp.sin(dlon / 2) ** 2
    c = 2 * jnp.arctan2(jnp.sqrt(a), jnp.sqrt(1 - a))
    return jnp.mean((_EARTH_RADIUS_KM * c) ** 2)


def haversine_mse_loss(output, target, *, block_rows=1024, use_pallas=None):
    """Pallas TPU implementation of HaversineMSELoss.forward.

    output, target: (N, 2) arrays of [lat_deg, lon_deg]. Returns scalar f32 loss.
    """
    assert output.shape == target.shape
    n, c = output.shape
    assert c == 2, "expected (N, 2) [lat, lon] inputs"

    if use_pallas is None:
        # Small batches: custom-call + wrapper pre-pass overhead dominates;
        # let XLA fuse the plain elementwise+reduce expression instead.
        use_pallas = n >= 65536
    output = output.astype(jnp.float32)
    target = target.astype(jnp.float32)
    if not use_pallas:
        return _haversine_mse_ref(output, target)

    # ---- block / grid selection (padding bounded to <8 rows per block) ----
    rows = pl.cdiv(n, _LANES)
    # Cap tile rows: double-buffered (4, blk, 128) f32 inputs = 4096*blk bytes;
    # blk=2048 -> 8 MiB, comfortably inside v5e's 16 MiB scoped-VMEM default.
    block_rows = max(_SUBLANES, min(block_rows, 2048))
    grid = pl.cdiv(rows, block_rows)
    if rows >= 2 * _SUBLANES:
        # v7x megacore: give the "parallel" axis at least 2 steps to shard
        # across both TensorCores (no effect on v5e/v6e).
        grid = max(grid, 2)
    blk = _round_up(pl.cdiv(rows, grid), _SUBLANES)
    rows_padded = grid * blk
    n_padded = rows_padded * _LANES

    # ---- single lane-dense slab: (4, rows_padded, 128), zero padded --------
    # Zero padding => lat=lon=0 for both points => distance 0 => no
    # contribution to the sum; the mean divides by the true N below.
    coords = jnp.concatenate([output, target], axis=1)          # (N, 4)
    coords = coords.T                                            # (4, N)
    coords = jnp.pad(coords, ((0, 0), (0, n_padded - n)))
    coords = coords.reshape(4, rows_padded, _LANES)

    psums = pl.pallas_call(
        _haversine_partial_kernel,
        out_shape=jax.ShapeDtypeStruct((grid, _SUBLANES, _LANES), jnp.float32),
        grid=(grid,),
        # One DMA per step: whole (4, blk, 128) tile.
        in_specs=[pl.BlockSpec((4, blk, _LANES), lambda i: (0, i, 0))],
        # Lane-dense, (8,128)-aligned unmasked stores; one block per grid step.
        out_specs=pl.BlockSpec((1, _SUBLANES, _LANES), lambda i: (i, 0, 0)),
        compiler_params=pltpu.CompilerParams(
            dimension_semantics=("parallel",),   # shards tiles across TCs on v7x
        ),
        cost_estimate=pl.CostEstimate(
            flops=20 * n_padded,
            transcendentals=6 * n_padded,        # 3 cos + 1 sqrt + atan2(~2 EUP)
            bytes_accessed=4 * 4 * n_padded + 4 * grid * _SUBLANES * _LANES,
        ),
    )(coords)

    # Final tiny reduction + unbiased mean over the true N (not the padded N).
    # (If exact float64 parity mattered for very large N, sum psums in f64 here.)
    return jnp.sum(psums) / jnp.float32(n)


if __name__ == "__main__":
    key = jax.random.PRNGKey(0)
    k1, k2, k3, k4 = jax.random.split(key, 4)

    # Batch of predicted / target (lat, lon) pairs.  N is deliberately not a
    # multiple of 128 so the zero-padding path is exercised; default block_rows
    # yields a 2-step parallel grid (rows=32 -> grid=2 for v7x megacore).
    n = 4000
    out_main = jax.random.uniform(k1, (n, 2), jnp.float32, minval=-90.0, maxval=90.0)
    tgt_main = jax.random.uniform(k2, (n, 2), jnp.float32, minval=-90.0, maxval=90.0)

    loss = haversine_mse_loss(out_main, tgt_main, use_pallas=True)
    jax.block_until_ready(loss)
    ref = _haversine_mse_ref(out_main, tgt_main)
    np.testing.assert_allclose(np.asarray(loss), np.asarray(ref), rtol=1e-4, atol=1e-2)

    # Multi-step grid path (test-only tiny tiles; production keeps blk >= ~512).
    loss_multi = haversine_mse_loss(out_main, tgt_main, block_rows=8, use_pallas=True)
    jax.block_until_ready(loss_multi)
    np.testing.assert_allclose(
        np.asarray(loss_multi), np.asarray(ref), rtol=1e-4, atol=1e-2
    )

    # Tiny batch (heavily padded single tile), forcing the Pallas path.
    out_small = jax.random.uniform(k3, (8, 2), jnp.float32, minval=-90.0, maxval=90.0)
    tgt_small = jax.random.uniform(k4, (8, 2), jnp.float32, minval=-90.0, maxval=90.0)
    loss_small = haversine_mse_loss(out_small, tgt_small, use_pallas=True)
    jax.block_until_ready(loss_small)
    ref_small = _haversine_mse_ref(out_small, tgt_small)
    np.testing.assert_allclose(
        np.asarray(loss_small), np.asarray(ref_small), rtol=1e-4, atol=1e-2
    )

    print("KERNEL_OK")
</pallas_src>

<mosaic_0001>
module attributes {stable_mosaic.version = 11 : i64} {
  func.func @_haversine_partial_kernel(%arg0: i32, %arg1: memref<4x16x128xf32, #tpu.memory_space<vmem>>, %arg2: memref<1x8x128xf32, #tpu.memory_space<vmem>>) attributes {dimension_semantics = [#tpu.dimension_semantics<parallel>], iteration_bounds = array<i64: 2>, scalar_prefetch = 0 : i64, scratch_operands = 0 : i64, tpu.core_type = #tpu.core_type<tc>, window_params = [{transform_indices = @transform_0, window_bounds = array<i64: 4, 16, 128>}, {transform_indices = @transform_1, window_bounds = array<i64: 1, 8, 128>}]} {
    %c0 = arith.constant 0 : index
    %c0_0 = arith.constant 0 : index
    %c0_1 = arith.constant 0 : index
    %0 = vector.load %arg1[%c0, %c0_0, %c0_1] : memref<4x16x128xf32, #tpu.memory_space<vmem>>, vector<1x16x128xf32>
    %1 = vector.shape_cast %0 : vector<1x16x128xf32> to vector<16x128xf32>
    %cst = arith.constant 0.0174532924 : f32
    %2 = vector.broadcast %cst : f32 to vector<16x128xf32>
    %3 = arith.mulf %1, %2 : vector<16x128xf32>
    %c1 = arith.constant 1 : index
    %c0_2 = arith.constant 0 : index
    %c0_3 = arith.constant 0 : index
    %4 = vector.load %arg1[%c1, %c0_2, %c0_3] : memref<4x16x128xf32, #tpu.memory_space<vmem>>, vector<1x16x128xf32>
    %5 = vector.shape_cast %4 : vector<1x16x128xf32> to vector<16x128xf32>
    %cst_4 = arith.constant 0.0174532924 : f32
    %6 = vector.broadcast %cst_4 : f32 to vector<16x128xf32>
    %7 = arith.mulf %5, %6 : vector<16x128xf32>
    %c2 = arith.constant 2 : index
    %c0_5 = arith.constant 0 : index
    %c0_6 = arith.constant 0 : index
    %8 = vector.load %arg1[%c2, %c0_5, %c0_6] : memref<4x16x128xf32, #tpu.memory_space<vmem>>, vector<1x16x128xf32>
    %9 = vector.shape_cast %8 : vector<1x16x128xf32> to vector<16x128xf32>
    %cst_7 = arith.constant 0.0174532924 : f32
    %10 = vector.broadcast %cst_7 : f32 to vector<16x128xf32>
    %11 = arith.mulf %9, %10 : vector<16x128xf32>
    %c3 = arith.constant 3 : index
    %c0_8 = arith.constant 0 : index
    %c0_9 = arith.constant 0 : index
    %12 = vector.load %arg1[%c3, %c0_8, %c0_9] : memref<4x16x128xf32, #tpu.memory_space<vmem>>, vector<1x16x128xf32>
    %13 = vector.shape_cast %12 : vector<1x16x128xf32> to vector<16x128xf32>
    %cst_10 = arith.constant 0.0174532924 : f32
    %14 = vector.broadcast %cst_10 : f32 to vector<16x128xf32>
    %15 = arith.mulf %13, %14 : vector<16x128xf32>
    %16 = arith.subf %11, %3 : vector<16x128xf32>
    %17 = math.cos %16 : vector<16x128xf32>
    %18 = arith.subf %15, %7 : vector<16x128xf32>
    %19 = math.cos %18 : vector<16x128xf32>
    %20 = arith.addf %3, %11 : vector<16x128xf32>
    %21 = math.cos %20 : vector<16x128xf32>
    %cst_11 = arith.constant 1.000000e+00 : f32
    %22 = vector.broadcast %cst_11 : f32 to vector<16x128xf32>
    %23 = arith.subf %22, %17 : vector<16x128xf32>
    %cst_12 = arith.constant 5.000000e-01 : f32
    %24 = vector.broadcast %cst_12 : f32 to vector<16x128xf32>
    %25 = arith.mulf %24, %23 : vector<16x128xf32>
    %26 = arith.addf %17, %21 : vector<16x128xf32>
    %cst_13 = arith.constant 2.500000e-01 : f32
    %27 = vector.broadcast %cst_13 : f32 to vector<16x128xf32>
    %28 = arith.mulf %27, %26 : vector<16x128xf32>
    %cst_14 = arith.constant 1.000000e+00 : f32
    %29 = vector.broadcast %cst_14 : f32 to vector<16x128xf32>
    %30 = arith.subf %29, %19 : vector<16x128xf32>
    %31 = arith.mulf %28, %30 : vector<16x128xf32>
    %32 = arith.addf %25, %31 : vector<16x128xf32>
    %cst_15 = arith.constant 0.000000e+00 : f32
    %cst_16 = arith.constant 1.000000e+00 : f32
    %33 = vector.broadcast %cst_15 : f32 to vector<16x128xf32>
    %34 = arith.maximumf %33, %32 : vector<16x128xf32>
    %35 = vector.broadcast %cst_16 : f32 to vector<16x128xf32>
    %36 = arith.minimumf %35, %34 : vector<16x128xf32>
    %cst_17 = arith.constant 1.000000e+00 : f32
    %37 = vector.broadcast %cst_17 : f32 to vector<16x128xf32>
    %38 = arith.subf %37, %36 : vector<16x128xf32>
    %39 = arith.mulf %36, %38 : vector<16x128xf32>
    %40 = math.sqrt %39 : vector<16x128xf32>
    %cst_18 = arith.constant 2.000000e+00 : f32
    %41 = vector.broadcast %cst_18 : f32 to vector<16x128xf32>
    %42 = arith.mulf %41, %40 : vector<16x128xf32>
    %cst_19 = arith.constant 2.000000e+00 : f32
    %43 = vector.broadcast %cst_19 : f32 to vector<16x128xf32>
    %44 = arith.mulf %43, %36 : vector<16x128xf32>
    %cst_20 = arith.constant 1.000000e+00 : f32
    %45 = vector.broadcast %cst_20 : f32 to vector<16x128xf32>
    %46 = arith.subf %45, %44 : vector<16x128xf32>
    %47 = math.atan2 %42, %46 : vector<16x128xf32>
    %cst_21 = arith.constant 6.371000e+03 : f32
    %48 = vector.broadcast %cst_21 : f32 to vector<16x128xf32>
    %49 = arith.mulf %48, %47 : vector<16x128xf32>
    %50 = arith.mulf %49, %49 : vector<16x128xf32>
    %51 = vector.shape_cast %50 : vector<16x128xf32> to vector<2x8x128xf32>
    %cst_22 = arith.constant dense<0.000000e+00> : vector<8x128xf32>
    %52 = vector.multi_reduction <add>, %51, %cst_22 [0] : vector<2x8x128xf32> to vector<8x128xf32>
    %c0_23 = arith.constant 0 : index
    %c0_24 = arith.constant 0 : index
    %c0_25 = arith.constant 0 : index
    %53 = vector.load %arg2[%c0_23, %c0_24, %c0_25] : memref<1x8x128xf32, #tpu.memory_space<vmem>>, vector<1x8x128xf32>
    %54 = vector.shape_cast %53 : vector<1x8x128xf32> to vector<8x128xf32>
    %55 = vector.shape_cast %52 : vector<8x128xf32> to vector<1x8x128xf32>
    tpu.vector_store %arg2[%c0_23, %c0_24, %c0_25], %55 {strides = array<i32>} : memref<1x8x128xf32, #tpu.memory_space<vmem>>, vector<1x8x128xf32>,
    return
  }
  func.func @transform_0(%arg0: i32) -> (i32, i32, i32) {
    %c0_i32 = arith.constant 0 : i32
    %c0_i32_0 = arith.constant 0 : i32
    %c0_i32_1 = arith.constant 0 : i32
    return %c0_i32, %arg0, %c0_i32_0 : i32, i32, i32
  }
  func.func @transform_1(%arg0: i32) -> (i32, i32, i32) {
    %c0_i32 = arith.constant 0 : i32
    %c0_i32_0 = arith.constant 0 : i32
    %c0_i32_1 = arith.constant 0 : i32
    return %arg0, %c0_i32, %c0_i32_0 : i32, i32, i32
  }
}

</mosaic_0001>

<bundles_post_ra>
// kernel: tpu_custom_call.1
= control target key start
LH: loop header
LB: loop body
LE: loop exit
PB: predicated region body
PF: predicated region fallthrough
CT: control target
= control target key end

     0   :  { %6 = vsyncpa [#allocation3], 0  ;;  %s2003_s0 = inlined_call_operand.hbm [shape: f32[4,32,128], index: 0, kind: input, shape index: {}]   ;;  %s2004_s1 = inlined_call_operand.hbm [shape: f32[2,8,128], index: 1, kind: output, shape index: {}]  }
   0x1   :  { %8 = vsyncpa [#allocation3 + $0x1], 0 }
   0x2   :  { %9 = vsyncpa [#allocation4], 0 }
   0x3   :  { %11 = vsyncpa [#allocation4 + $0x1], 0  ;;  %s1287_s6 = smov 0   ;;  %s1289_s7 = smov 0  }
   0x4   :  { %s1291_s8 = smov 0   ;;  %s1293_s9 = smov 0  }
   0x5 LB: > { %s1308_s10 = sadd.s32 4294967295, %s1260_s9   ;;  %s1030_s11 = sadd.s32 4294967294, %s1260_s9   ;;  %s1260_s9 = sphi %s1293_s9, %s2024_s9   ;;  %s1256_s8 = sphi %s1291_s8, %s2023_s8   ;;  %s1252_s7 = sphi %s1289_s7, %s2022_s7   ;;  %s1248_s6 = sphi %s1287_s6, %s2021_s6  }
   0x6   : > { %s1312_s12 = sadd.s32 1, %s1260_s9   ;;  %s24_s13 = sadd.s32 1, %s1256_s8 }
   0x7   : > { %s21_s14 = ssub.s32 %s1260_s9, %s1312_s12  ;;  %p31_p0 = scmp.ne.s32.totalorder %s1256_s8, %s1252_s7 }
   0x8   : > { %p22_p1 = scmp.eq.s32.totalorder %s21_s14, 0  ;;  %p32_p2 = scmp.eq.s32.totalorder %s1260_s9, 0 }
   0x9   : > { %p37_p3 = scmp.ne.s32.totalorder %s1252_s7, %s1248_s6  ;;  %p38_p4 = scmp.eq.s32.totalorder %s1308_s10, 0 }
   0xa   : > { %s1324_s15 = scalar_select %p22_p1, %s1256_s8, %s24_s13  }
   0xb   : > { %p1326_p5 = por %p32_p2, %p31_p0  ;;  %p1330_p6 = por %p38_p4, %p37_p3 }
   0xc   : > { %p61_p7 = scmp.eq.s32.totalorder %s1308_s10, 1  ;;  %p67_p8 = scmp.eq.s32.totalorder %s1030_s11, 1 }
   0xd   : > { %p1032_p11 = scmp.ge.s32.totalorder %s1260_s9, 2 }
   0xe   : > { %p1335_p9 = por %p61_p7, %p31_p0  ;;  %p1339_p10 = por %p67_p8, %p37_p3 }
   0xf   : > { %83 = sbr.rel (%p1032_p11) target bundleno = 35 (0x23), region = 16 }
  0x16   : > { %s87_s20 = sand.u32 1, %s1256_s8   ;;  %s1075_s21 = sshll.u32 %s1260_s9, 8 }
  0x17   : > { %s1033_s22 = sshll.u32 %s87_s20, 6  ;;  %s97_s25 = scalar_lea.hbm %s2003_s0, %s1075_s21 }
  0x18   : > { %s1100_s26 = scalar_select %p1326_p5, [#allocation0], [#allocation8] }
  0x19   : > { %s91_s27 = scalar_lea.vmem [#allocation2], %s1033_s22  ;;  %s1262_s30 = smov 512  }
  0x1a   : > { %s110_s28 = sshll.u32 %s91_s27, 4  ;;  %s102_s29 = sld [smem:[%s1100_s26]]   ;;  %s111_s28 = int_to_ptr.vmem [resolvable:$true] %s110_s28 }
  0x1b   : > { %1101 = sst [smem:[#allocation7]] (%p1326_p5), %s1262_s30  ;;  %s1263_s2 = smov 256  }
  0x1c   : > { %1102 = sst [smem:[#allocation7 + $0x1]] (%p1326_p5), %s1263_s2  ;;  %s1264_s3 = smov 2  }
  0x1d   : > { %1103 = sst [smem:[#allocation7 + $0x2]] (%p1326_p5), %s1264_s3  ;;  %s1265_s4 = smov 128  }
  0x1e   : > { %1104 = sst [smem:[#allocation7 + $0x3]] (%p1326_p5), %s1265_s4  ;;  %s1266_s11 = smov 8  }
  0x1f   : > { %1105 = sst [smem:[#allocation7 + $0x4]] (%p1326_p5), %s1265_s4  ;;  %s88_s14 = scalar_lea.sflag [#allocation3], %s87_s20 }
  0x20   : > { %s1036_s5 = sshll.u32 %s102_s29, 26  ;;  %1106 = sst [smem:[#allocation7 + $0x5]] (%p1326_p5), %s1266_s11 }
  0x21   : > { %s1037_s13 = sadd.s32 134217728, %s1036_s5  ;;  %s1267_s21 = smov [#allocation6]  }
  0x22   : > { %1107 = dma.general (%p1326_p5), %s97_s25, 1024, %s111_s28, %s88_s14, %s1267_s21, [#allocation7], %s1037_s13, 0  }
  0x23 PF: > { %p1038_p12 = scmp.ge.s32.totalorder %s1260_s9, 1  ;;  %p131_p13 = scmp.lt.s32.totalorder %s1260_s9, 3 }
  0x25   : > { %p132_p0 = pnand %p1038_p12, %p131_p13 }
  0x26   : > { %s1370_s22 = sand.u32 (!%p132_p0), 1, %s1252_s7  }
  0x27   : > { %135 = sbr.rel (%p132_p0) target bundleno = 338 (0x152), region = 24  ;;  %s1039_s23 = sshll.u32 (!%p132_p0), %s1370_s22, 6 }
  0x28   : > { %s138_s24 = scalar_lea.sflag (!%p132_p0), [#allocation3], %s1370_s22  ;;  %s1374_s26 = scalar_lea.vmem (!%p132_p0), [#allocation2], %s1039_s23 }
  0x2e   : > { %1239 = dma.done.wait (%p1330_p6), %s138_s24, 1024  }
  0x2f   : > { %1241 = vsyncadd (%p1330_p6), %s138_s24, 4294966272  ;;  %v161_v0 = vld [vmem:[%s1374_s26] sm:$0xff]  ;;  %v162_v1 = vld [vmem:[%s1374_s26 + $0x8] sm:$0xff]  ;;  %v1268_v31 = vmov 683565275   ;;  %s1040_s16 = sshll.u32 %s1370_s22, 3 }
  0x30   : > { %v1382_v2 = vmul.f32 0.017453292, %v161_v0  ;;  %v1384_v3 = vmul.f32 0.017453292, %v162_v1  ;;  %v1043_v4 = vld [vmem:[%s1374_s26 + $0x20] sm:$0xff]  ;;  %v1044_v5 = vld [vmem:[%s1374_s26 + $0x28] sm:$0xff] }
  0x31   : > { %v1388_v6 = vmul.f32 0.017453292, %v1043_v4  ;;  %v1390_v7 = vmul.f32 0.017453292, %v1044_v5  ;;  %v1041_v10 = vld [vmem:[%s1374_s26 + $0x10] sm:$0xff]  ;;  %s1072_s17 = sshll.u32 %s1308_s10, 7 }
  0x32   : > { %v1045_v11 = vld [vmem:[%s1374_s26 + $0x30] sm:$0xff]  ;;  %v168_v14 = vmul.f32 0.017453292, %v1041_v10  ;;  %v1269_v33 = vmov 2475754826   ;;  %s159_s20 = scalar_lea.vmem [#allocation5], %s1040_s16  ;;  %s1959_s29 = scalar_lea.hbm %s2004_s1, %s1072_s17 }
  0x33   : > { %v1394_v8 = vsub.f32 %v1388_v6, %v1382_v2  ;;  %v1398_v9 = vsub.f32 %v1390_v7, %v1384_v3  ;;  %v178_v15 = vmul.f32 0.017453292, %v1045_v11  ;;  %v1270_v35 = vmov 2131351028   ;;  %s960_s25 = sshll.u32 %s159_s20, 4  ;;  %s947_s30 = scalar_lea.sflag [#allocation4], %s1370_s22  ;;  %s1961_s25 = int_to_ptr.vmem [resolvable:$true] %s960_s25 }
  0x34   : > { %v1271_v38 = vmov 2102212464   ;;  %v1272_v40 = vmov 920167782   ;;  %v1273_v47 = vmov 1326507024  }
  0x35   : > { %v185_v12 = vand.u32 2139095040, %v1394_v8  ;;  %v288_v13 = vand.u32 2139095040, %v1398_v9  ;;  %v182_v19 = vand.u32 2147483647, %v1394_v8  ;;  %v1405_v22 = vsub.f32 %v178_v15, %v168_v14  ;;  %s1194_s2 = scalar_lea.vmem %s1961_s25, 128  ;;  %s1276_s10 = smov [#allocation5]  }
  0x36   : > { %v285_v15 = vand.u32 2147483647, %v1398_v9  ;;  %p1195_p1 = scmp.ne.s32.totalorder %s1961_s25, %s1194_s2  ;;  %s1198_s3 = sshll.u32 %s1276_s10, 4  ;;  %s1199_s3 = int_to_ptr.vmem [resolvable:$false] %s1198_s3 }
  0x37   : > { %v186_v16 = vshrl.u32 %v185_v12, 23  ;;  %v289_v17 = vshrl.u32 %v288_v13, 23  ;;  %v189_v24 = vand.u32 8388607, %v182_v19  ;;  %v393_v27 = vand.u32 2139095040, %v1405_v22  ;;  %s1200_s4 = scalar_lea.vmem %s1199_s3, 256  ;;  %p1201_p4 = scmp.lt.s32.totalorder %s1961_s25, %s1199_s3 }
  0x38   : > { %p1196_p2 = pnand %p1195_p1, %p1335_p9  ;;  %p1202_p5 = scmp.lt.s32.totalorder %s1200_s4, %s1194_s2 }
  0x39   : > { %v1047_v18 = vadd.s32 4294967169, %v186_v16  ;;  %v1051_v20 = vadd.s32 4294967169, %v289_v17  ;;  %v190_v37 = vor.u32 8388608, %v189_v24  ;;  %v394_v45 = vshrl.u32 %v393_v27, 23 }
  0x3a   : > { %p1197_p3 = pneg %p1196_p2  ;;  %p1203_p6 = por %p1202_p5, %p1201_p4 }
  0x3b   : > { %v192_v21 = vadd.s32 1, %v1047_v18  ;;  %v295_v23 = vadd.s32 1, %v1051_v20  ;;  %v230_v57 = vshll.u32 %v190_v37, 8  ;;  %v1055_v60 = vadd.s32 4294967169, %v394_v45  ;;  %v1046_v37 = vld [vmem:[%s1374_s26 + $0x38] sm:$0xff] }
  0x3c   : > { %p1204_p7 = pnand %p1203_p6, %p1197_p3 }
  0x3d   : > { %vm193_vm0 = vcmp.gt.s32.totalorder %v192_v21, 0  ;;  %vm296_vm1 = vcmp.gt.s32.totalorder %v295_v23, 0  ;;  %v400_v14 = vadd.s32 1, %v1055_v60 }
  0x3e   : > { %v194_v25 = vsel %vm193_vm0, %v192_v21, 0  ;;  %v297_v29 = vsel %vm296_vm1, %v295_v23, 0 }
  0x3f   : > { %v196_v26 = vand.u32 31, %v194_v25  ;;  %v1410_v28 = vshrl.u32 %v194_v25, 5  ;;  %v299_v49 = vand.u32 31, %v297_v29  ;;  %v1455_v16 = vshrl.u32 %v297_v29, 5 }
  0x40   : > { %vm401_vm6 = vcmp.gt.s32.totalorder %v400_v14, 0 }
  0x41   : > { %v197_v30 = vsub.s32 32, %v196_v26  ;;  %v199_v32 = vshll.u32 %v1268_v31, %v196_v26  ;;  %v202_v34 = vshll.u32 %v1269_v33, %v196_v26  ;;  %v205_v36 = vshll.u32 %v1270_v35, %v196_v26 }
  0x42   : > { %v208_v39 = vshll.u32 %v1271_v38, %v196_v26  ;;  %v211_v41 = vshll.u32 %v1272_v40, %v196_v26  ;;  %vm214_vm2 = vcmp.lt.s32.totalorder %v1410_v28, 1  ;;  %vm217_vm3 = vcmp.lt.s32.totalorder %v1410_v28, 4 }
  0x43   : > { %v200_v42 = vshrl.u32 %v1269_v33, %v197_v30  ;;  %v203_v43 = vshrl.u32 %v1270_v35, %v197_v30  ;;  %v206_v44 = vshrl.u32 %v1271_v38, %v197_v30  ;;  %v209_v46 = vshrl.u32 %v1272_v40, %v197_v30 }
  0x44   : > { %v212_v48 = vshrl.u32 %v1273_v47, %v197_v30  ;;  %vm216_vm4 = vcmp.lt.s32.totalorder %v1410_v28, 3  ;;  %vm215_vm5 = vcmp.lt.s32.totalorder %v1410_v28, 2  ;;  %v1438_v63 = vsub.s32 32, %v299_v49 }
  0x45   : > { %v201_v50 = vor.u32 %v200_v42, %v199_v32  ;;  %v204_v51 = vor.u32 %v203_v43, %v202_v34  ;;  %v207_v52 = vor.u32 %v206_v44, %v205_v36  ;;  %v210_v53 = vor.u32 %v209_v46, %v208_v39  ;;  %v1042_v36 = vld [vmem:[%s1374_s26 + $0x18] sm:$0xff] }
  0x46   : > { %v213_v54 = vor.u32 %v212_v48, %v211_v41  ;;  %v198_v4 = vshrl.u32 %v1268_v31, %v197_v30  ;;  %v311_v17 = vshll.u32 %v1271_v38, %v299_v49  ;;  %v312_v18 = vshrl.u32 %v1272_v40, %v1438_v63 }
  0x47   : > { %v222_v55 = vsel %vm214_vm2, %v201_v50, %v204_v51  ;;  %v226_v56 = vsel %vm214_vm2, %v204_v51, %v207_v52  ;;  %v223_v58 = vsel %vm217_vm3, %v210_v53, 920167782  ;;  %v219_v11 = vsel %vm217_vm3, %v207_v52, 2102212464 }
  0x48   : > { %v227_v59 = vsel %vm217_vm3, %v213_v54, 1326507024  ;;  %v224_v61 = vsel %vm216_vm4, %v207_v52, %v223_v58  ;;  %v302_v20 = vshll.u32 %v1268_v31, %v299_v49  ;;  %v303_v21 = vshrl.u32 %v1269_v33, %v1438_v63 }
  0x49   : > { %v228_v62 = vsel %vm216_vm4, %v210_v53, %v227_v59  ;;  %v225_v0 = vsel %vm215_vm5, %v222_v55, %v224_v61  ;;  %v305_v23 = vshll.u32 %v1269_v33, %v299_v49  ;;  %v306_v24 = vshrl.u32 %v1270_v35, %v1438_v63 }
  0x4a   : > { %v229_v1 = vsel %vm215_vm5, %v226_v56, %v228_v62  ;;  %v1445_v5 = vmul.u32.u64.low %v230_v57, %v225_v0  ;;  %v1446_v10 = vmul.u32.u64.high %v230_v57, %v225_v0, %v1445_v5  ;;  %v218_v25 = vsel %vm214_vm2, %v198_v4, %v201_v50 }
  0x4b   : > { %v1451_v12 = vmul.u32.u64.low %v230_v57, %v229_v1  ;;  %v1452_v13 = vmul.u32.u64.high %v230_v57, %v229_v1, %v1451_v12  ;;  %v220_v26 = vsel %vm216_vm4, %v204_v51, %v219_v11  ;;  %v308_v27 = vshll.u32 %v1270_v35, %v299_v49 }
  0x4c   : > { %v309_v29 = vshrl.u32 %v1271_v38, %v1438_v63  ;;  %v313_v30 = vor.u32 %v312_v18, %v311_v17  ;;  %v314_v32 = vshll.u32 %v1272_v40, %v299_v49  ;;  %v315_v34 = vshrl.u32 %v1273_v47, %v1438_v63 }
  0x4d   : > { %vm320_vm7 = vcmp.lt.s32.totalorder %v1455_v16, 4  ;;  %v221_v39 = vsel %vm215_vm5, %v218_v25, %v220_v26  ;;  %v292_v41 = vand.u32 8388607, %v285_v15  ;;  %v1483_v42 = vor.u32 %v303_v21, %v302_v20 }
  0x4e   : > { %v1485_v43 = vor.u32 %v306_v24, %v305_v23  ;;  %v240_v44 = vadd.s32 1, %v1446_v10  ;;  %v310_v45 = vor.u32 %v309_v29, %v308_v27  ;;  %vm317_vm8 = vcmp.lt.s32.totalorder %v1455_v16, 1 }
  0x4f   : > { %v402_v46 = vsel %vm401_vm6, %v400_v14, 0  ;;  %vm239_vm9 = vc.u32 %v1452_v13, %v1445_v5  ;;  %v316_v48 = vor.u32 %v315_v34, %v314_v32  ;;  %vm319_vm10 = vcmp.lt.s32.totalorder %v1455_v16, 3 }
  0x50   : > { %v326_v28 = vsel %vm320_vm7, %v313_v30, 920167782  ;;  %v169_v49 = vmul.f32 0.017453292, %v1042_v36  ;;  %v179_v50 = vmul.f32 0.017453292, %v1046_v37  ;;  %v237_v52 = vmul.u32 %v230_v57, %v221_v39 }
  0x51   : > { %v390_v51 = vand.u32 2147483647, %v1405_v22  ;;  %v293_v53 = vor.u32 8388608, %v292_v41  ;;  %v404_v54 = vand.u32 31, %v402_v46  ;;  %v241_v55 = vsel %vm239_vm9, %v240_v44, %v1446_v10 }
  0x52   : > { %vm318_vm11 = vcmp.lt.s32.totalorder %v1455_v16, 2  ;;  %v325_v56 = vsel %vm317_vm8, %v1483_v42, %v1485_v43  ;;  %v327_v58 = vsel %vm319_vm10, %v310_v45, %v326_v28  ;;  %v330_v59 = vsel %vm320_vm7, %v316_v48, 1326507024 }
  0x53   : > { %v405_v60 = vsub.s32 32, %v404_v54  ;;  %v1505_v61 = vsub.f32 %v179_v50, %v169_v49  ;;  %v397_v57 = vand.u32 8388607, %v390_v51  ;;  %v242_v62 = vadd.s32 %v241_v55, %v237_v52 }
  0x54   : > { %v328_v0 = vsel %vm318_vm11, %v325_v56, %v327_v58  ;;  %v329_v1 = vsel %vm317_vm8, %v1485_v43, %v310_v45  ;;  %v1514_v4 = vshll.u32 %v293_v53, 8  ;;  %v331_v10 = vsel %vm319_vm10, %v313_v30, %v330_v59 }
  0x55   : > { %v403_v11 = vshrl.u32 %v402_v46, 5  ;;  %v407_v12 = vshll.u32 %v1268_v31, %v404_v54  ;;  %v410_v14 = vshll.u32 %v1269_v33, %v404_v54  ;;  %v408_v17 = vshrl.u32 %v1269_v33, %v405_v60 }
  0x56   : > { %v411_v18 = vshrl.u32 %v1270_v35, %v405_v60  ;;  %v413_v20 = vshll.u32 %v1270_v35, %v404_v54  ;;  %v414_v21 = vshrl.u32 %v1271_v38, %v405_v60  ;;  %v416_v23 = vshll.u32 %v1271_v38, %v404_v54 }
  0x57   : > { %v496_v24 = vand.u32 2139095040, %v1505_v61  ;;  %v243_v25 = vadd.s32 536870912, %v242_v62  ;;  %v1527_v26 = vmul.u32.u64.low %v1514_v4, %v328_v0  ;;  %v1528_v27 = vmul.u32.u64.high %v1514_v4, %v328_v0, %v1527_v26 }
  0x58   : > { %v398_v29 = vor.u32 8388608, %v397_v57  ;;  %v332_v30 = vsel %vm318_vm11, %v329_v1, %v331_v10  ;;  %v417_v32 = vshrl.u32 %v1272_v40, %v405_v60  ;;  %v419_v34 = vshll.u32 %v1272_v40, %v404_v54 }
  0x59   : > { %vm425_vm12 = vcmp.lt.s32.totalorder %v403_v11, 4  ;;  %v409_v36 = vor.u32 %v408_v17, %v407_v12  ;;  %v412_v37 = vor.u32 %v411_v18, %v410_v14  ;;  %v415_v39 = vor.u32 %v414_v21, %v413_v20 }
  0x5a   : > { %v420_v41 = vshrl.u32 %v1273_v47, %v405_v60  ;;  %v418_v44 = vor.u32 %v417_v32, %v416_v23  ;;  %vm422_vm13 = vcmp.lt.s32.totalorder %v403_v11, 1  ;;  %vm424_vm14 = vcmp.lt.s32.totalorder %v403_v11, 3 }
  0x5b   : > { %v497_v46 = vshrl.u32 %v496_v24, 23  ;;  %v301_v48 = vshrl.u32 %v1268_v31, %v1438_v63  ;;  %v1539_v28 = vmul.u32.u64.low %v1514_v4, %v332_v30  ;;  %v1540_v49 = vmul.u32.u64.high %v1514_v4, %v332_v30, %v1539_v28 }
  0x5c   : > { %v421_v50 = vor.u32 %v420_v41, %v419_v34  ;;  %v1542_v52 = vshrl.u32 %v243_v25, 30  ;;  %v406_v53 = vshrl.u32 %v1268_v31, %v405_v60  ;;  %vm423_vm15 = vcmp.lt.s32.totalorder %v403_v11, 2 }
  0x5d   : > { %v431_v54 = vsel %vm425_vm12, %v418_v44, 920167782  ;;  %v427_v55 = vsel %vm425_vm12, %v415_v39, 2102212464  ;;  %v430_v56 = vsel %vm422_vm13, %v409_v36, %v412_v37  ;;  %v322_v59 = vsel %vm320_vm7, %v310_v45, 2102212464 }
  0x5e   : > { %v432_v58 = vsel %vm424_vm14, %v415_v39, %v431_v54  ;;  %v435_v63 = vsel %vm425_vm12, %v421_v50, 1326507024  ;;  %v434_v57 = vsel %vm422_vm13, %v412_v37, %v415_v39  ;;  %v438_v0 = vshll.u32 %v398_v29, 8 }
  0x5f   : > { %v1059_v1 = vadd.s32 4294967169, %v497_v46  ;;  %v436_v60 = vsel %vm424_vm14, %v418_v44, %v435_v63  ;;  %v426_v10 = vsel %vm422_vm13, %v406_v53, %v409_v36  ;;  %v428_v12 = vsel %vm424_vm14, %v412_v37, %v427_v55 }
  0x60   : > { %v433_v14 = vsel %vm423_vm15, %v430_v56, %v432_v58  ;;  %v245_v17 = vshll.u32 %v1542_v52, 30  ;;  %v321_v18 = vsel %vm317_vm8, %v301_v48, %v1483_v42  ;;  %v323_v45 = vsel %vm319_vm10, %v1485_v43, %v322_v59 }
  0x61   : > { %v437_v20 = vsel %vm423_vm15, %v434_v57, %v436_v60  ;;  %v503_v24 = vadd.s32 1, %v1059_v1  ;;  %v429_v25 = vsel %vm423_vm15, %v426_v10, %v428_v12  ;;  %v324_v32 = vsel %vm318_vm11, %v321_v18, %v323_v45 }
  0x62   : > { %v1565_v21 = vmul.u32.u64.low %v438_v0, %v437_v20  ;;  %v1566_v23 = vmul.u32.u64.high %v438_v0, %v437_v20, %v1565_v21  ;;  %v1569_v29 = vmul.u32.u64.low %v438_v0, %v433_v14  ;;  %v1570_v30 = vmul.u32.u64.high %v438_v0, %v433_v14, %v1569_v29 }
  0x63   : > { %v343_v42 = vadd.s32 1, %v1528_v27  ;;  %vm504_vm0 = vcmp.gt.s32.totalorder %v503_v24, 0  ;;  %v1576_v34 = vsub.s32 %v242_v62, %v245_v17  ;;  %vm342_vm1 = vc.u32 %v1540_v49, %v1527_v26 }
  0x64   : > { %v505_v43 = vsel %vm504_vm0, %v503_v24, 0  ;;  %v445_v36 = vmul.u32 %v438_v0, %v429_v25  ;;  %vm447_vm2 = vc.u32 %v1566_v23, %v1569_v29  ;;  %v340_v11 = vmul.u32 %v1514_v4, %v324_v32 }
  0x65   : > { %v448_v37 = vadd.s32 1, %v1570_v30  ;;  %v507_v39 = vand.u32 31, %v505_v43  ;;  %v344_v16 = vsel %vm342_vm1, %v343_v42, %v1528_v27  ;;  %v493_v41 = vand.u32 2147483647, %v1505_v61 }
  0x66   : > { %v248_v62 = vsub.s32 0, %v1576_v34  ;;  %v345_v28 = vadd.s32 %v344_v16, %v340_v11  ;;  %v506_v63 = vshrl.u32 %v505_v43, 5 }
  0x67   : > { %v449_v44 = vsel %vm447_vm2, %v448_v37, %v1570_v30  ;;  %v508_v46 = vsub.s32 32, %v507_v39  ;;  %v500_v53 = vand.u32 8388607, %v493_v41  ;;  %v510_v4 = vshll.u32 %v1268_v31, %v507_v39 }
  0x68   : > { %v450_v48 = vadd.s32 %v449_v44, %v445_v36  ;;  %v1048_v55 = vmin.u32 %v248_v62, %v1576_v34  ;;  %v513_v27 = vshll.u32 %v1269_v33, %v507_v39  ;;  %v516_v59 = vshll.u32 %v1270_v35, %v507_v39 }
  0x69   : > { %v511_v54 = vshrl.u32 %v1269_v33, %v508_v46  ;;  %v514_v56 = vshrl.u32 %v1270_v35, %v508_v46  ;;  %v517_v57 = vshrl.u32 %v1271_v38, %v508_v46  ;;  %v346_v0 = vadd.s32 536870912, %v345_v28 }
  0x6a   : > { %v451_v50 = vadd.s32 536870912, %v450_v48  ;;  %v519_v1 = vshll.u32 %v1271_v38, %v507_v39  ;;  %v520_v60 = vshrl.u32 %v1272_v40, %v508_v46  ;;  %v501_v12 = vor.u32 8388608, %v500_v53 }
  0x6b   : > { %v512_v14 = vor.u32 %v511_v54, %v510_v4  ;;  %v515_v17 = vor.u32 %v514_v56, %v513_v27  ;;  %v522_v45 = vshll.u32 %v1272_v40, %v507_v39  ;;  %v523_v20 = vshrl.u32 %v1273_v47, %v508_v46 }
  0x6c   : > { %v1595_v58 = vshrl.u32 %v451_v50, 30  ;;  %v521_v18 = vor.u32 %v520_v60, %v519_v1  ;;  %v250_v21 = vclz %v1048_v55  ;;  %v518_v24 = vor.u32 %v517_v57, %v516_v59 }
  0x6d   : > { %vm525_vm3 = vcmp.lt.s32.totalorder %v506_v63, 1  ;;  %v1604_v25 = vshrl.u32 %v346_v0, 30  ;;  %v509_v30 = vshrl.u32 %v1268_v31, %v508_v46  ;;  %vm528_vm4 = vcmp.lt.s32.totalorder %v506_v63, 4 }
  0x6e   : > { %v453_v10 = vshll.u32 %v1595_v58, 30  ;;  %v524_v42 = vor.u32 %v523_v20, %v522_v45  ;;  %vm527_vm5 = vcmp.lt.s32.totalorder %v506_v63, 3  ;;  %v530_v43 = vsel %vm528_vm4, %v518_v24, 2102212464 }
  0x6f   : > { %vm526_vm6 = vcmp.lt.s32.totalorder %v506_v63, 2  ;;  %v533_v36 = vsel %vm525_vm3, %v512_v14, %v515_v17  ;;  %v534_v11 = vsel %vm528_vm4, %v521_v18, 920167782  ;;  %v541_v37 = vshll.u32 %v501_v12, 8 }
  0x70   : > { %v1607_v32 = vsub.s32 %v450_v48, %v453_v10  ;;  %v1049_v39 = vadd.s32 4294967294, %v250_v21  ;;  %v529_v16 = vsel %vm525_vm3, %v509_v30, %v512_v14  ;;  %v531_v62 = vsel %vm527_vm5, %v515_v17, %v530_v43 }
  0x71   : > { %v535_v44 = vsel %vm527_vm5, %v518_v24, %v534_v11  ;;  %v537_v46 = vsel %vm525_vm3, %v515_v17, %v518_v24  ;;  %v538_v53 = vsel %vm528_vm4, %v524_v42, 1326507024  ;;  %v1621_v4 = vadd.f32 %v1388_v6, %v1382_v2 }
  0x72   : > { %v456_v48 = vsub.s32 0, %v1607_v32  ;;  %v536_v50 = vsel %vm526_vm6, %v533_v36, %v535_v44  ;;  %v348_v54 = vshll.u32 %v1604_v25, 30  ;;  %v539_v55 = vsel %vm527_vm5, %v521_v18, %v538_v53 }
  0x73   : > { %v1625_v27 = vmul.u32.u64.low %v541_v37, %v536_v50  ;;  %v1626_v56 = vmul.u32.u64.high %v541_v37, %v536_v50, %v1625_v27  ;;  %v532_v59 = vsel %vm526_vm6, %v529_v16, %v531_v62  ;;  %v540_v57 = vsel %vm526_vm6, %v537_v46, %v539_v55 }
  0x74   : > { %vm1050_vm7 = vcmp.lt.s32.totalorder %v1049_v39, 0  ;;  %v1631_v0 = vmul.u32.u64.low %v541_v37, %v540_v57  ;;  %v1632_v1 = vmul.u32.u64.high %v541_v37, %v540_v57, %v1631_v0  ;;  %v1056_v60 = vmin.u32 %v456_v48, %v1607_v32 }
  0x75   : > { %v601_v2 = vand.u32 2139095040, %v1621_v4  ;;  %v1636_v6 = vsub.s32 %v345_v28, %v348_v54  ;;  %v548_v10 = vmul.u32 %v541_v37, %v532_v59  ;;  %v551_v12 = vadd.s32 1, %v1626_v56 }
  0x76   : > { %v253_v14 = vsel %vm1050_vm7, 0, %v1049_v39  ;;  %vm550_vm8 = vc.u32 %v1632_v1, %v1625_v27  ;;  %v458_v63 = vclz %v1056_v60  ;;  %v1645_v28 = vadd.f32 %v1390_v7, %v1384_v3 }
  0x77   : > { %v602_v17 = vshrl.u32 %v601_v2, 23  ;;  %v552_v18 = vsel %vm550_vm8, %v551_v12, %v1626_v56  ;;  %v258_v45 = vsub.s32 4294967266, %v253_v14  ;;  %v351_v20 = vsub.s32 0, %v1636_v6 }
  0x78   : > { %v553_v21 = vadd.s32 %v552_v18, %v548_v10  ;;  %v238_v43 = vadd.s32 %v1445_v5, %v1452_v13  ;;  %v254_v36 = vsub.s32 32, %v253_v14  ;;  %v1057_v11 = vadd.s32 4294967294, %v458_v63 }
  0x79   : > { %v1063_v24 = vadd.s32 4294967169, %v602_v17  ;;  %v259_v37 = vadd.s32 127, %v258_v45  ;;  %v1052_v39 = vmin.u32 %v351_v20, %v1636_v6  ;;  %v598_v16 = vand.u32 2147483647, %v1621_v4 }
  0x7a   : > { %v554_v30 = vadd.s32 536870912, %v553_v21  ;;  %v704_v46 = vand.u32 2139095040, %v1645_v28  ;;  %v255_v3 = vshll.u32 %v1576_v34, %v253_v14  ;;  %v256_v7 = vshrl.u32 %v238_v43, %v254_v36 }
  0x7b   : > { %v608_v42 = vadd.s32 1, %v1063_v24  ;;  %vm1058_vm10 = vcmp.lt.s32.totalorder %v1057_v11, 0  ;;  %v260_v50 = vshll.u32 %v259_v37, 23  ;;  %v353_v5 = vclz %v1052_v39 }
  0x7c   : > { %v1651_v62 = vshrl.u32 %v554_v30, 30  ;;  %v605_v13 = vand.u32 8388607, %v598_v16  ;;  %v705_v55 = vshrl.u32 %v704_v46, 23  ;;  %v1658_v56 = vsel %vm1058_vm10, 0, %v1057_v11 }
  0x7d   : > { %vm609_vm9 = vcmp.gt.s32.totalorder %v608_v42, 0  ;;  %v1662_v0 = vor.u32 %v256_v7, %v255_v3  ;;  %v1666_v10 = vor.u32 4788187, %v260_v50  ;;  %v1053_v12 = vadd.s32 4294967294, %v353_v5 }
  0x7e   : > { %v610_v44 = vsel %vm609_vm9, %v608_v42, 0  ;;  %v556_v53 = vshll.u32 %v1651_v62, 30  ;;  %v606_v14 = vor.u32 8388608, %v605_v13  ;;  %v466_v63 = vsub.s32 4294967266, %v1658_v56 }
  0x7f   : > { %v612_v48 = vand.u32 31, %v610_v44  ;;  %v611_v34 = vshrl.u32 %v610_v44, 5  ;;  %v1067_v20 = vadd.s32 4294967169, %v705_v55  ;;  %vm1054_vm15 = vcmp.lt.s32.totalorder %v1053_v12, 0 }
  0x80   : > { %v1670_v18 = vsub.s32 %v553_v21, %v556_v53  ;;  %v646_v21 = vshll.u32 %v606_v14, 8  ;;  %vm184_vm2 = vcmp.lt.s32.totalorder %v1394_v8, 0  ;;  %vm1722_vm7 = vcmp.le.f32.partialorder %v182_v19, 0.7853982 }
  0x81   : > { %v613_v54 = vsub.s32 32, %v612_v48  ;;  %v615_v59 = vshll.u32 %v1268_v31, %v612_v48  ;;  %v618_v57 = vshll.u32 %v1269_v33, %v612_v48  ;;  %v621_v17 = vshll.u32 %v1270_v35, %v612_v48 }
  0x82   : > { %v624_v43 = vshll.u32 %v1271_v38, %v612_v48  ;;  %v627_v11 = vshll.u32 %v1272_v40, %v612_v48  ;;  %vm630_vm11 = vcmp.lt.s32.totalorder %v611_v34, 1  ;;  %vm631_vm12 = vcmp.lt.s32.totalorder %v611_v34, 2 }
  0x83   : > { %v616_v60 = vshrl.u32 %v1269_v33, %v613_v54  ;;  %v619_v2 = vshrl.u32 %v1270_v35, %v613_v54  ;;  %v614_v45 = vshrl.u32 %v1268_v31, %v613_v54  ;;  %v622_v42 = vshrl.u32 %v1271_v38, %v613_v54 }
  0x84   : > { %v625_v36 = vshrl.u32 %v1272_v40, %v613_v54  ;;  %v628_v37 = vshrl.u32 %v1273_v47, %v613_v54  ;;  %vm633_vm13 = vcmp.lt.s32.totalorder %v611_v34, 4  ;;  %v559_v44 = vsub.s32 0, %v1670_v18 }
  0x85   : > { %v617_v24 = vor.u32 %v616_v60, %v615_v59  ;;  %v620_v30 = vor.u32 %v619_v2, %v618_v57  ;;  %v623_v39 = vor.u32 %v622_v42, %v621_v17  ;;  %vm632_vm14 = vcmp.lt.s32.totalorder %v611_v34, 3 }
  0x86   : > { %v626_v46 = vor.u32 %v625_v36, %v624_v43  ;;  %v629_v3 = vor.u32 %v628_v37, %v627_v11  ;;  %v711_v13 = vadd.s32 1, %v1067_v20  ;;  %v446_v54 = vadd.s32 %v1569_v29, %v1566_v23 }
  0x87   : > { %v634_v7 = vsel %vm630_vm11, %v614_v45, %v617_v24  ;;  %v635_v50 = vsel %vm633_vm13, %v623_v39, 2102212464  ;;  %v638_v5 = vsel %vm630_vm11, %v617_v24, %v620_v30  ;;  %v642_v59 = vsel %vm630_vm11, %v620_v30, %v623_v39 }
  0x88   : > { %v636_v53 = vsel %vm632_vm14, %v620_v30, %v635_v50  ;;  %v639_v55 = vsel %vm633_vm13, %v626_v46, 920167782  ;;  %v643_v48 = vsel %vm633_vm13, %v629_v3, 1326507024  ;;  %v462_v57 = vsub.s32 32, %v1658_v56 }
  0x89   : > { %v467_v60 = vadd.s32 127, %v466_v63  ;;  %v1060_v2 = vmin.u32 %v559_v44, %v1670_v18  ;;  %v640_v14 = vsel %vm632_vm14, %v623_v39, %v639_v55  ;;  %v644_v17 = vsel %vm632_vm14, %v626_v46, %v643_v48 }
  0x8a   : > { %vm712_vm0 = vcmp.gt.s32.totalorder %v711_v13, 0  ;;  %v463_v45 = vshll.u32 %v1607_v32, %v1658_v56  ;;  %v637_v20 = vsel %vm631_vm12, %v634_v7, %v636_v53  ;;  %v641_v24 = vsel %vm631_vm12, %v638_v5, %v640_v14 }
  0x8b   : > { %v645_v30 = vsel %vm631_vm12, %v642_v59, %v644_v17  ;;  %v1691_v23 = vmul.u32.u64.low %v646_v21, %v641_v24  ;;  %v1692_v29 = vmul.u32.u64.high %v646_v21, %v641_v24, %v1691_v23  ;;  %v464_v63 = vshrl.u32 %v446_v54, %v462_v57 }
  0x8c   : > { %v1688_v42 = vmul.u32.u64.low %v646_v21, %v645_v30  ;;  %v1689_v43 = vmul.u32.u64.high %v646_v21, %v645_v30, %v1688_v42  ;;  %v468_v36 = vshll.u32 %v467_v60, 23  ;;  %v701_v11 = vand.u32 2147483647, %v1645_v28 }
  0x8d   : > { %v713_v37 = vsel %vm712_vm0, %v711_v13, 0  ;;  %v561_v39 = vclz %v1060_v2  ;;  %v264_v56 = vcvt.s32.f32 %v1662_v0  ;;  %v653_v44 = vmul.u32 %v646_v21, %v637_v20 }
  0x8e   : > { %v715_v32 = vand.u32 31, %v713_v37  ;;  %v262_v34 = vand.u32 2147483647, %v1666_v10  ;;  %v1699_v46 = vsel %vm1054_vm15, 0, %v1053_v12  ;;  %vm655_vm1 = vc.u32 %v1689_v43, %v1691_v23 }
  0x8f   : > { %v656_v3 = vadd.s32 1, %v1692_v29  ;;  %v465_v7 = vor.u32 %v464_v63, %v463_v45  ;;  %v469_v50 = vor.u32 4788187, %v468_v36  ;;  %v708_v5 = vand.u32 8388607, %v701_v11 }
  0x90   : > { %v716_v13 = vsub.s32 32, %v715_v32  ;;  %v1061_v53 = vadd.s32 4294967294, %v561_v39  ;;  %v718_v21 = vshll.u32 %v1268_v31, %v715_v32  ;;  %v721_v10 = vshll.u32 %v1269_v33, %v715_v32 }
  0x91   : > { %v657_v0 = vsel %vm655_vm1, %v656_v3, %v1692_v29  ;;  %v714_v55 = vshrl.u32 %v713_v37, 5  ;;  %v724_v48 = vshll.u32 %v1270_v35, %v715_v32  ;;  %v727_v60 = vshll.u32 %v1271_v38, %v715_v32 }
  0x92   : > { %v658_v12 = vadd.s32 %v657_v0, %v653_v44  ;;  %v719_v59 = vshrl.u32 %v1269_v33, %v716_v13  ;;  %v722_v54 = vshrl.u32 %v1270_v35, %v716_v13  ;;  %v725_v57 = vshrl.u32 %v1271_v38, %v716_v13 }
  0x93   : > { %v728_v2 = vshrl.u32 %v1272_v40, %v716_v13  ;;  %v265_v14 = vmul.f32 %v264_v56, %v262_v34  ;;  %v709_v45 = vor.u32 8388608, %v708_v5  ;;  %v730_v20 = vshll.u32 %v1272_v40, %v715_v32 }
  0x94   : > { %v659_v17 = vadd.s32 536870912, %v658_v12  ;;  %v720_v24 = vor.u32 %v719_v59, %v718_v21  ;;  %v723_v30 = vor.u32 %v722_v54, %v721_v10  ;;  %v731_v42 = vshrl.u32 %v1273_v47, %v716_v13 }
  0x95   : > { %v729_v33 = vor.u32 %v728_v2, %v727_v60  ;;  %v472_v29 = vcvt.s32.f32 %v465_v7  ;;  %v726_v63 = vor.u32 %v725_v57, %v724_v48  ;;  %vm733_vm3 = vcmp.lt.s32.totalorder %v714_v55, 1 }
  0x96   : > { %v1718_v35 = vshrl.u32 %v659_v17, 30  ;;  %v470_v38 = vand.u32 2147483647, %v469_v50  ;;  %vm1062_vm4 = vcmp.lt.s32.totalorder %v1061_v53, 0  ;;  %vm735_vm5 = vcmp.lt.s32.totalorder %v714_v55, 3 }
  0x97   : > { %vm736_vm6 = vcmp.lt.s32.totalorder %v714_v55, 4  ;;  %v717_v37 = vshrl.u32 %v1268_v31, %v716_v13  ;;  %v732_v47 = vor.u32 %v731_v42, %v730_v20  ;;  %vm734_vm8 = vcmp.lt.s32.totalorder %v714_v55, 2 }
  0x98   : > { %v661_v40 = vshll.u32 %v1718_v35, 30  ;;  %vm392_vm9 = vcmp.lt.s32.totalorder %v1405_v22, 0  ;;  %v741_v39 = vsel %vm733_vm3, %v720_v24, %v723_v30  ;;  %v742_v32 = vsel %vm736_vm6, %v729_v33, 920167782 }
  0x99   : > { %v749_v56 = vshll.u32 %v709_v45, 8  ;;  %v361_v44 = vsub.s32 4294967266, %v1699_v46  ;;  %v738_v19 = vsel %vm736_vm6, %v726_v63, 2102212464  ;;  %v743_v3 = vsel %vm735_vm5, %v726_v63, %v742_v32 }
  0x9a   : > { %v1732_v34 = vsub.s32 %v658_v12, %v661_v40  ;;  %v266_v7 = vxor.u32 2147483648, %v265_v14  ;;  %v473_v50 = vmul.f32 %v472_v29, %v470_v38  ;;  %v564_v31 = vsel %vm1062_vm4, 0, %v1061_v53 }
  0x9b   : > { %v744_v5 = vsel %vm734_vm8, %v741_v39, %v743_v3  ;;  %v737_v0 = vsel %vm733_vm3, %v717_v37, %v720_v24  ;;  %v745_v21 = vsel %vm733_vm3, %v723_v30, %v726_v63  ;;  %v746_v10 = vsel %vm736_vm6, %v732_v47, 1326507024 }
  0x9c   : > { %v664_v13 = vsub.s32 0, %v1732_v34  ;;  %v739_v12 = vsel %vm735_vm5, %v723_v30, %v738_v19  ;;  %v747_v59 = vsel %vm735_vm5, %v729_v33, %v746_v10  ;;  %v341_v53 = vadd.s32 %v1527_v26, %v1540_v49 }
  0x9d   : > { %v1744_v48 = vmul.u32.u64.low %v749_v56, %v744_v5  ;;  %v1745_v54 = vmul.u32.u64.high %v749_v56, %v744_v5, %v1744_v48  ;;  %v357_v57 = vsub.s32 32, %v1699_v46  ;;  %v569_v60 = vsub.s32 4294967266, %v564_v31 }
  0x9e   : > { %v1064_v2 = vmin.u32 %v664_v13, %v1732_v34  ;;  %v267_v17 = vsel %vm184_vm2, %v266_v7, %v265_v14  ;;  %v362_v45 = vadd.s32 127, %v361_v44  ;;  %v474_v20 = vxor.u32 2147483648, %v473_v50 }
  0x9f   : > { %v748_v24 = vsel %vm734_vm8, %v745_v21, %v747_v59  ;;  %v740_v33 = vsel %vm734_vm8, %v737_v0, %v739_v12  ;;  %vm1761_vm10 = vcmp.le.f32.partialorder %v390_v51, 0.7853982  ;;  %v549_v49 = vadd.s32 %v1625_v27, %v1632_v1 }
  0xa0   : > { %v666_v30 = vclz %v1064_v2  ;;  %v1756_v42 = vmul.u32.u64.low %v749_v56, %v748_v24  ;;  %v1757_v29 = vmul.u32.u64.high %v749_v56, %v748_v24, %v1756_v42  ;;  %v565_v14 = vsub.s32 32, %v564_v31 }
  0xa1   : > { %v759_v63 = vadd.s32 1, %v1745_v54  ;;  %v268_v38 = vsub.s32 4, %v1542_v52  ;;  %v358_v55 = vshll.u32 %v1636_v6, %v1699_v46  ;;  %v570_v40 = vadd.s32 127, %v569_v60 }
  0xa2   : > { %v1065_v37 = vadd.s32 4294967294, %v666_v30  ;;  %v270_v51 = vsel %vm1722_vm7, %v1394_v8, %v267_v17  ;;  %v359_v47 = vshrl.u32 %v341_v53, %v357_v57  ;;  %v363_v39 = vshll.u32 %v362_v45, 23 }
  0xa3   : > { %v756_v32 = vmul.u32 %v749_v56, %v740_v33  ;;  %v475_v27 = vsel %vm392_vm9, %v474_v20, %v473_v50  ;;  %v654_v1 = vadd.s32 %v1691_v23, %v1689_v43  ;;  %vm758_vm12 = vc.u32 %v1757_v29, %v1744_v48 }
  0xa4   : > { %vm1066_vm11 = vcmp.lt.s32.totalorder %v1065_v37, 0  ;;  %v566_v6 = vshll.u32 %v1670_v18, %v564_v31  ;;  %v567_v46 = vshrl.u32 %v549_v49, %v565_v14  ;;  %v760_v19 = vsel %vm758_vm12, %v759_v63, %v1745_v54 }
  0xa5   : > { %v669_v44 = vsel %vm1066_vm11, 0, %v1065_v37  ;;  %v571_v3 = vshll.u32 %v570_v40, 23  ;;  %v360_v13 = vor.u32 %v359_v47, %v358_v55  ;;  %v364_v50 = vor.u32 4788187, %v363_v39 }
  0xa6   : > { %v670_v7 = vsub.s32 32, %v669_v44  ;;  %v671_v56 = vshll.u32 %v1732_v34, %v669_v44  ;;  %v674_v5 = vsub.s32 4294967266, %v669_v44  ;;  %v761_v0 = vadd.s32 %v760_v19, %v756_v32 }
  0xa7   : > { %1162 = vcosq.f32 %v270_v51  ;;  %v478_v43 = vsel %vm1761_vm10, %v1405_v22, %v475_v27  ;;  %v269_v18 = vsel %vm184_vm2, %v268_v38, %v1542_v52  ;;  %v476_v31 = vsub.s32 4, %v1595_v58 }
  0xa8   : > { %v672_v23 = vshrl.u32 %v654_v1, %v670_v7  ;;  %v675_v21 = vadd.s32 127, %v674_v5  ;;  %1164 = vsinq.f32 %v270_v51  ;;  %v762_v10 = vadd.s32 536870912, %v761_v0 }
  0xa9   : > { %v568_v34 = vor.u32 %v567_v46, %v566_v6  ;;  %v572_v12 = vor.u32 4788187, %v571_v3  ;;  %v365_v53 = vand.u32 2147483647, %v364_v50  ;;  %v367_v57 = vcvt.s32.f32 %v360_v13 }
  0xaa   : > { %v673_v59 = vor.u32 %v672_v23, %v671_v56  ;;  %v676_v54 = vshll.u32 %v675_v21, 23  ;;  %1166 = vcosq.f32 %v478_v43  ;;  %v1790_v60 = vshrl.u32 %v762_v10, 30 }
  0xab   : > { %1168 = vsinq.f32 %v478_v43  ;;  %v271_v45 = vsel %vm1722_vm7, 0, %v269_v18  ;;  %v477_v20 = vsel %vm392_vm9, %v476_v31, %v1595_v58  ;;  %v573_v24 = vand.u32 2147483647, %v572_v12 }
  0xac   : > { %v677_v2 = vor.u32 4788187, %v676_v54  ;;  %v680_v17 = vcvt.s32.f32 %v673_v59  ;;  %v764_v52 = vshll.u32 %v1790_v60, 30  ;;  %v575_v30 = vcvt.s32.f32 %v568_v34 }
  0xad   : > { %v368_v42 = vmul.f32 %v367_v57, %v365_v53  ;;  %v1800_v63 = vand.u32 3, %v271_v45  ;;  %v479_v38 = vsel %vm1761_vm10, 0, %v477_v20  ;;  %vm600_vm13 = vcmp.lt.s32.totalorder %v1621_v4, 0 }
  0xae   : > { %v678_v33 = vand.u32 2147483647, %v677_v2  ;;  %v1798_v49 = vsub.s32 %v761_v0, %v764_v52  ;;  %v576_v40 = vmul.f32 %v575_v30, %v573_v24  ;;  %vm1808_vm14 = vcmp.le.f32.partialorder %v598_v16, 0.7853982 }
  0xaf   : > { %v684_v51 = vsub.s32 4, %v1718_v35  ;;  %vm1815_vm15 = vcmp.le.f32.partialorder %v285_v15, 0.7853982  ;;  %vm287_vm0 = vcmp.lt.s32.totalorder %v1398_v9, 0  ;;  %v369_v39 = vxor.u32 2147483648, %v368_v42 }
  0xb0   : > { %v681_v14 = vmul.f32 %v680_v17, %v678_v33  ;;  %v767_v36 = vsub.s32 0, %v1798_v49  ;;  %v483_v27 = vand.u32 3, %v479_v38  ;;  %vm1823_vm1 = vcmp.le.f32.partialorder %v493_v41, 0.7853982 }
  0xb1   : > { %v1163_v55 = vpop.eup %1162  ;;  %vm495_vm2 = vcmp.lt.s32.totalorder %v1505_v61, 0  ;;  %vm276_vm3 = vcmp.lt.s32.totalorder %v1800_v63, 2  ;;  %vm277_vm4 = vcmp.eq.s32.totalorder %v1800_v63, 0  ;;  %vm280_vm5 = vcmp.eq.s32.totalorder %v1800_v63, 2 }
  0xb2   : > { %v682_v37 = vxor.u32 2147483648, %v681_v14  ;;  %v1165_v47 = vpop.eup %1164  ;;  %v1068_v32 = vmin.u32 %v767_v36, %v1798_v49  ;;  %v577_v41 = vxor.u32 2147483648, %v576_v40  ;;  %v685_v19 = vsel %vm600_vm13, %v684_v51, %v1718_v35 }
  0xb3   : > { %v370_v3 = vsel %vm287_vm0, %v369_v39, %v368_v42  ;;  %v371_v7 = vsub.s32 4, %v1604_v25  ;;  %v278_v5 = vxor.u32 2147483648, %v1165_v47  ;;  %v281_v13 = vxor.u32 2147483648, %v1163_v55 }
  0xb4   : > { %v683_v15 = vsel %vm600_vm13, %v682_v37, %v681_v14  ;;  %v1167_v1 = vpop.eup %1166  ;;  %v769_v46 = vclz %v1068_v32  ;;  %vm488_vm6 = vcmp.eq.s32.totalorder %v483_v27, 2  ;;  %v687_v43 = vsel %vm1808_vm14, 0, %v685_v19 }
  0xb5   : > { %v686_v6 = vsel %vm1808_vm14, %v1621_v4, %v683_v15  ;;  %v1169_v44 = vpop.eup %1168  ;;  %v489_v50 = vxor.u32 2147483648, %v1167_v1  ;;  %v757_v23 = vadd.s32 %v1744_v48, %v1757_v29  ;;  %vm484_vm8 = vcmp.lt.s32.totalorder %v483_v27, 2 }
  0xb6   : > { %1170 = vcosq.f32 %v686_v6  ;;  %v1069_v56 = vadd.s32 4294967294, %v769_v46  ;;  %v486_v0 = vxor.u32 2147483648, %v1169_v44  ;;  %vm485_vm9 = vcmp.eq.s32.totalorder %v483_v27, 0 }
  0xb7   : > { %1172 = vsinq.f32 %v686_v6  ;;  %v578_v35 = vsel %vm495_vm2, %v577_v41, %v576_v40  ;;  %v373_v18 = vsel %vm1815_vm15, %v1398_v9, %v370_v3  ;;  %v279_v12 = vsel %vm277_vm4, %v1163_v55, %v278_v5 }
  0xb8   : > { %vm1070_vm7 = vcmp.lt.s32.totalorder %v1069_v56, 0  ;;  %v282_v48 = vsel %vm280_vm5, %v281_v13, %v1165_v47  ;;  %v490_v29 = vsel %vm488_vm6, %v489_v50, %v1169_v44  ;;  %v691_v59 = vand.u32 3, %v687_v43 }
  0xb9   : > { %v772_v21 = vsel %vm1070_vm7, 0, %v1069_v56  ;;  %v487_v54 = vsel %vm485_vm9, %v1167_v1, %v486_v0  ;;  %v581_v53 = vsel %vm1823_vm1, %v1505_v61, %v578_v35  ;;  %vm274_vm10 = vweird.f32 %v1394_v8 }
  0xba   : > { %v773_v31 = vsub.s32 32, %v772_v21  ;;  %v774_v10 = vshll.u32 %v1798_v49, %v772_v21  ;;  %v777_v34 = vsub.s32 4294967266, %v772_v21  ;;  %1174 = vcosq.f32 %v373_v18 }
  0xbb   : > { %vm482_vm11 = vweird.f32 %v1405_v22  ;;  %v372_v17 = vsel %vm287_vm0, %v371_v7, %v1604_v25  ;;  %1176 = vsinq.f32 %v373_v18  ;;  %v283_v24 = vsel %vm276_vm3, %v279_v12, %v282_v48 }
  0xbc   : > { %v775_v57 = vshrl.u32 %v757_v23, %v773_v31  ;;  %v778_v2 = vadd.s32 127, %v777_v34  ;;  %v491_v30 = vsel %vm484_vm8, %v487_v54, %v490_v29  ;;  %1178 = vcosq.f32 %v581_v53 }
  0xbd   : > { %vm696_vm12 = vcmp.eq.s32.totalorder %v691_v59, 2  ;;  %vm693_vm13 = vcmp.eq.s32.totalorder %v691_v59, 0  ;;  %v579_v38 = vsub.s32 4, %v1651_v62  ;;  %1180 = vsinq.f32 %v581_v53 }
  0xbe   : > { %v776_v45 = vor.u32 %v775_v57, %v774_v10  ;;  %v779_v52 = vshll.u32 %v778_v2, 23  ;;  %vm692_vm14 = vcmp.lt.s32.totalorder %v691_v59, 2  ;;  %vm690_vm0 = vweird.f32 %v1621_v4 }
  0xbf   : > { %v284_v63 = vsel %vm274_vm10, nan, %v283_v24  ;;  %v492_v40 = vsel %vm482_vm11, nan, %v491_v30  ;;  %v374_v37 = vsel %vm1815_vm15, 0, %v372_v17  ;;  %v580_v32 = vsel %vm495_vm2, %v579_v38, %v1651_v62 }
  0xc0   : > { %v1171_v20 = vpop.eup %1170  ;;  %v780_v49 = vor.u32 4788187, %v779_v52  ;;  %v783_v14 = vcvt.s32.f32 %v776_v45  ;;  %v804_v39 = vsub.f32 1.0, %v284_v63  ;;  %vm1881_vm3 = vcmp.le.f32.partialorder %v701_v11, 0.7853982 }
  0xc1   : > { %v1173_v33 = vpop.eup %1172  ;;  %v697_v42 = vxor.u32 2147483648, %v1171_v20  ;;  %vm703_vm4 = vcmp.lt.s32.totalorder %v1645_v28, 0  ;;  %v787_v26 = vsub.s32 4, %v1790_v60  ;;  %v812_v15 = vsub.f32 1.0, %v492_v40 }
  0xc2   : > { %v694_v25 = vxor.u32 2147483648, %v1173_v33  ;;  %v781_v55 = vand.u32 2147483647, %v780_v49  ;;  %v582_v46 = vsel %vm1823_vm1, 0, %v580_v32  ;;  %v806_v44 = vmul.f32 0.5, %v804_v39 }
  0xc3   : > { %v698_v36 = vsel %vm696_vm12, %v697_v42, %v1173_v33  ;;  %v378_v11 = vand.u32 3, %v374_v37  ;;  %v788_v7 = vsel %vm703_vm4, %v787_v26, %v1790_v60  ;;  %v586_v13 = vand.u32 3, %v582_v46 }
  0xc4   : > { %v695_v58 = vsel %vm693_vm13, %v1171_v20, %v694_v25  ;;  %v784_v47 = vmul.f32 %v783_v14, %v781_v55  ;;  %v1175_v1 = vpop.eup %1174  ;;  %v790_v43 = vsel %vm1881_vm3, 0, %v788_v7  ;;  %vm377_vm8 = vweird.f32 %v1398_v9 }
  0xc5   : > { %v699_v51 = vsel %vm692_vm14, %v695_v58, %v698_v36  ;;  %v1177_v6 = vpop.eup %1176  ;;  %vm380_vm15 = vcmp.eq.s32.totalorder %v378_v11, 0  ;;  %v384_v0 = vxor.u32 2147483648, %v1175_v1  ;;  %vm383_vm1 = vcmp.eq.s32.totalorder %v378_v11, 2 }
  0xc6   : > { %v700_v4 = vsel %vm690_vm0, nan, %v699_v51  ;;  %v785_v22 = vxor.u32 2147483648, %v784_v47  ;;  %v1179_v19 = vpop.eup %1178  ;;  %v381_v16 = vxor.u32 2147483648, %v1177_v6  ;;  %vm588_vm2 = vcmp.eq.s32.totalorder %v586_v13, 0 }
  0xc7   : > { %v808_v27 = vadd.f32 %v700_v4, %v284_v63  ;;  %v1181_v5 = vpop.eup %1180  ;;  %v592_v35 = vxor.u32 2147483648, %v1179_v19  ;;  %vm591_vm5 = vcmp.eq.s32.totalorder %v586_v13, 2  ;;  %v794_v18 = vand.u32 3, %v790_v43 }
  0xc8   : > { %v786_v62 = vsel %vm703_vm4, %v785_v22, %v784_v47  ;;  %v589_v23 = vxor.u32 2147483648, %v1181_v5  ;;  %vm379_vm6 = vcmp.lt.s32.totalorder %v378_v11, 2  ;;  %v382_v31 = vsel %vm380_vm15, %v1175_v1, %v381_v16 }
  0xc9   : > { %v810_v41 = vmul.f32 0.25, %v808_v27  ;;  %v789_v3 = vsel %vm1881_vm3, %v1645_v28, %v786_v62  ;;  %v385_v10 = vsel %vm383_vm1, %v384_v0, %v1177_v6  ;;  %vm587_vm7 = vcmp.lt.s32.totalorder %v586_v13, 2 }
  0xca   : > { %1182 = vcosq.f32 %v789_v3  ;;  %v590_v34 = vsel %vm588_vm2, %v1179_v19, %v589_v23  ;;  %v593_v12 = vsel %vm591_vm5, %v592_v35, %v1181_v5  ;;  %vm585_vm9 = vweird.f32 %v1505_v61 }
  0xcb   : > { %v814_v56 = vmul.f32 %v812_v15, %v810_v41  ;;  %1184 = vsinq.f32 %v789_v3  ;;  %vm799_vm10 = vcmp.eq.s32.totalorder %v794_v18, 2  ;;  %v386_v53 = vsel %vm379_vm6, %v382_v31, %v385_v10 }
  0xcc   : > { %v594_v57 = vsel %vm587_vm7, %v590_v34, %v593_v12  ;;  %vm796_vm11 = vcmp.eq.s32.totalorder %v794_v18, 0  ;;  %vm795_vm12 = vcmp.lt.s32.totalorder %v794_v18, 2  ;;  %vm793_vm13 = vweird.f32 %v1645_v28 }
  0xcd   : > { %v816_v50 = vadd.f32 %v814_v56, %v806_v44  ;;  %v387_v52 = vsel %vm377_vm8, nan, %v386_v53  ;;  %v595_v20 = vsel %vm585_vm9, nan, %v594_v57 }
  0xce   : > { %v805_v9 = vsub.f32 1.0, %v387_v52  ;;  %v813_v42 = vsub.f32 1.0, %v595_v20 }
  0xcf   : > { %v818_v21 = vmax.f32 %v816_v50, 0.0 }
  0xd0   : > { %v807_v49 = vmul.f32 0.5, %v805_v9 }
  0xd1   : > { %v820_v60 = vmin.f32 %v818_v21, 1.0 }
  0xd3   : > { %v822_v48 = vsub.f32 1.0, %v820_v60  ;;  %v842_v38 = vmul.f32 2.0, %v820_v60 }
  0xd4   : > { %v1183_v29 = vpop.eup %1182 }
  0xd5   : > { %v824_v59 = vmul.f32 %v822_v48, %v820_v60  ;;  %v1185_v54 = vpop.eup %1184  ;;  %v800_v2 = vxor.u32 2147483648, %v1183_v29  ;;  %v1898_v28 = vsub.f32 1.0, %v842_v38 }
  0xd6   : > { %v797_v17 = vxor.u32 2147483648, %v1185_v54 }
  0xd7   : > { %1186 = vrsqrt.f32 %v824_v59  ;;  %v801_v45 = vsel %vm799_vm10, %v800_v2, %v1185_v54  ;;  %vm828_vm14 = vcmp.eq.f32.partialorder %v824_v59, inf  ;;  %v831_v55 = vand.u32 2147483648, %v824_v59 }
  0xd8   : > { %v798_v24 = vsel %vm796_vm11, %v1183_v29, %v797_v17  ;;  %vm830_vm0 = vcmp.eq.f32.partialorder %v824_v59, 0.0  ;;  %v1903_v32 = vand.u32 2147483647, %v1898_v28  ;;  %vm873_vm1 = vcmp.lt.f32.partialorder %v1898_v28, 0.0 }
  0xd9   : > { %v802_v30 = vsel %vm795_vm12, %v798_v24, %v801_v45  ;;  %vm876_vm2 = vcmp.lt.s32.totalorder %v1898_v28, 0  ;;  %vm880_vm5 = vcmp.ne.f32.partialorder %v1898_v28, %v1898_v28 }
  0xda   : > { %v803_v33 = vsel %vm793_vm13, nan, %v802_v30  ;;  %vm886_vm9 = vcmp.eq.s32.totalorder %v1903_v32, inf }
  0xdb   : > { %v809_v61 = vadd.f32 %v803_v33, %v387_v52 }
  0xdd   : > { %v811_v14 = vmul.f32 0.25, %v809_v61 }
  0xdf   : > { %v815_v25 = vmul.f32 %v813_v42, %v811_v14 }
  0xe1   : > { %v1187_v36 = vpop.eup %1186  ;;  %v817_v63 = vadd.f32 %v815_v25, %v807_v49 }
  0xe2   : > { %v827_v40 = vmul.f32 %v1187_v36, %v824_v59 }
  0xe3   : > { %v819_v58 = vmax.f32 %v817_v63, 0.0 }
  0xe4   : > { %v829_v37 = vsel %vm828_vm14, %v824_v59, %v827_v40  ;;  %v1274_v40 = vmov 0.0  }
  0xe5   : > { %v832_v51 = vsel %vm830_vm0, %v831_v55, %v829_v37  ;;  %v821_v47 = vmin.f32 %v819_v58, 1.0  ;;  %v877_v58 = vsel %vm876_vm2, 3.1415927, %v1274_v40 }
  0xe6   : > { %v1900_v39 = vmul.f32 2.0, %v832_v51 }
  0xe7   : > { %v823_v4 = vsub.f32 1.0, %v821_v47  ;;  %v843_v27 = vmul.f32 2.0, %v821_v47 }
  0xe8   : > { %v1906_v8 = vand.u32 2147483647, %v1900_v39  ;;  %vm878_vm6 = vcmp.eq.f32.partialorder %v1900_v39, 0.0  ;;  %vm881_vm7 = vcmp.ne.f32.partialorder %v1900_v39, %v1900_v39 }
  0xe9   : > { %v825_v22 = vmul.f32 %v823_v4, %v821_v47  ;;  %v1912_v44 = vsub.f32 1.0, %v843_v27  ;;  %vm882_vm8 = vmor %vm880_vm5, %vm881_vm7 }
  0xea   : > { %v849_v26 = vmax.f32 %v1903_v32, %v1906_v8  ;;  %v848_v15 = vmin.f32 %v1903_v32, %v1906_v8  ;;  %vm870_vm15 = vcmp.gt.f32.partialorder %v1906_v8, %v1903_v32  ;;  %vm887_vm10 = vcmp.eq.s32.totalorder %v1906_v8, inf }
  0xeb   : > { %1188 = vrsqrt.f32 %v825_v22  ;;  %vm835_vm3 = vcmp.eq.f32.partialorder %v825_v22, inf  ;;  %v838_v6 = vand.u32 2147483648, %v825_v22  ;;  %vm837_vm4 = vcmp.eq.f32.partialorder %v825_v22, 0.0  ;;  %vm888_vm11 = vmand %vm886_vm9, %vm887_vm10 }
  0xec   : > { %1190 = vrcp.f32 %v849_v26  ;;  %v1917_v56 = vand.u32 2147483647, %v1912_v44  ;;  %v1275_v26 = vmov 0.7853982   ;;  %vm923_vm13 = vcmp.lt.s32.totalorder %v1912_v44, 0 }
  0xed   : > { %v885_v27 = vsel %vm873_vm1, 2.3561945, %v1275_v26  ;;  %v891_v8 = vand.u32 2147483648, %v1900_v39  ;;  %vm927_vm14 = vcmp.ne.f32.partialorder %v1912_v44, %v1912_v44 }
  0xf5   : > { %v1189_v1 = vpop.eup %1188 }
  0xf6   : > { %v1191_v46 = vpop.eup %1190  ;;  %v834_v62 = vmul.f32 %v1189_v1, %v825_v22 }
  0xf7   : > { %v851_v41 = vmul.f32 %v1191_v46, %v848_v15 }
  0xf8   : > { %v836_v19 = vsel %vm835_vm3, %v825_v22, %v834_v62  ;;  %vm920_vm3 = vcmp.lt.f32.partialorder %v1912_v44, 0.0 }
  0xf9   : > { %v839_v11 = vsel %vm837_vm4, %v838_v6, %v836_v19  ;;  %v852_v3 = vmul.f32 %v851_v41, %v851_v41  ;;  %vm933_vm4 = vcmp.eq.s32.totalorder %v1917_v56, inf }
  0xfa   : > { %v1914_v7 = vmul.f32 2.0, %v839_v11  ;;  %v932_v11 = vsel %vm920_vm3, 2.3561945, %v1275_v26 }
  0xfb   : > { %v853_v5 = vmul.f32 0.002785687, %v852_v3 }
  0xfc   : > { %v1920_v13 = vand.u32 2147483647, %v1914_v7  ;;  %vm928_vm0 = vcmp.ne.f32.partialorder %v1914_v7, %v1914_v7 }
  0xfd   : > { %v854_v50 = vadd.f32 -0.015866, %v853_v5  ;;  %vm929_vm2 = vmor %vm927_vm14, %vm928_vm0 }
  0xfe   : > { %v896_v16 = vmax.f32 %v1917_v56, %v1920_v13  ;;  %v895_v18 = vmin.f32 %v1917_v56, %v1920_v13  ;;  %vm917_vm12 = vcmp.gt.f32.partialorder %v1920_v13, %v1917_v56 }
  0xff   : > { %v855_v0 = vmul.f32 %v854_v50, %v852_v3  ;;  %v938_v50 = vand.u32 2147483648, %v1914_v7 }
 0x100   : > { %1192 = vrcp.f32 %v896_v16 }
 0x101   : > { %v856_v43 = vadd.f32 0.04247222, %v855_v0 }
 0x103   : > { %v857_v23 = vmul.f32 %v856_v43, %v852_v3 }
 0x105   : > { %v858_v35 = vadd.f32 -0.074975304, %v857_v23 }
 0x107   : > { %v859_v21 = vmul.f32 %v858_v35, %v852_v3 }
 0x109   : > { %v860_v60 = vadd.f32 0.1064488, %v859_v21 }
 0x10a   : > { %v1193_v31 = vpop.eup %1192 }
 0x10b   : > { %v861_v10 = vmul.f32 %v860_v60, %v852_v3  ;;  %v898_v34 = vmul.f32 %v1193_v31, %v895_v18 }
 0x10d   : > { %v862_v12 = vadd.f32 -0.14207031, %v861_v10  ;;  %v899_v48 = vmul.f32 %v898_v34, %v898_v34 }
 0x10f   : > { %v863_v29 = vmul.f32 %v862_v12, %v852_v3  ;;  %v900_v59 = vmul.f32 0.002785687, %v899_v48 }
 0x111   : > { %v864_v54 = vadd.f32 0.19993454, %v863_v29  ;;  %v901_v53 = vadd.f32 -0.015866, %v900_v59 }
 0x113   : > { %v865_v57 = vmul.f32 %v864_v54, %v852_v3  ;;  %v902_v2 = vmul.f32 %v901_v53, %v899_v48 }
 0x115   : > { %v866_v17 = vadd.f32 -0.33333147, %v865_v57  ;;  %v903_v45 = vadd.f32 0.04247222, %v902_v2 }
 0x117   : > { %v867_v52 = vmul.f32 %v866_v17, %v852_v3  ;;  %v904_v20 = vmul.f32 %v903_v45, %v899_v48 }
 0x119   : > { %v868_v24 = vmul.f32 %v867_v52, %v851_v41  ;;  %v905_v30 = vadd.f32 -0.074975304, %v904_v20 }
 0x11b   : > { %v869_v9 = vadd.f32 %v868_v24, %v851_v41  ;;  %v906_v33 = vmul.f32 %v905_v30, %v899_v48  ;;  %v924_v41 = vsel %vm923_vm13, 3.1415927, %v1274_v40 }
 0x11d   : > { %v871_v61 = vsub.f32 1.5707964, %v869_v9  ;;  %v907_v42 = vadd.f32 0.1064488, %v906_v33 }
 0x11f   : > { %v872_v49 = vsel %vm870_vm15, %v871_v61, %v869_v9  ;;  %v908_v14 = vmul.f32 %v907_v42, %v899_v48  ;;  %vm934_vm15 = vcmp.eq.s32.totalorder %v1920_v13, inf }
 0x120   : > { %v874_v25 = vsub.f32 3.1415927, %v872_v49  ;;  %vm935_vm5 = vmand %vm933_vm4, %vm934_vm15 }
 0x121   : > { %v909_v38 = vadd.f32 -0.14207031, %v908_v14 }
 0x122   : > { %v875_v63 = vsel %vm873_vm1, %v874_v25, %v872_v49  ;;  %vm925_vm1 = vcmp.eq.f32.partialorder %v1914_v7, 0.0 }
 0x123   : > { %v910_v36 = vmul.f32 %v909_v38, %v899_v48  ;;  %v879_v51 = vsel %vm878_vm6, %v877_v58, %v875_v63 }
 0x124   : > { %v883_v22 = vsel %vm882_vm8, nan, %v879_v51 }
 0x125   : > { %v911_v55 = vadd.f32 0.19993454, %v910_v36  ;;  %v889_v1 = vsel %vm888_vm11, %v885_v27, %v883_v22 }
 0x126   : > { %v890_v32 = vand.u32 2147483647, %v889_v1 }
 0x127   : > { %v912_v37 = vmul.f32 %v911_v55, %v899_v48 }
 0x128   : > { %v892_v39 = vor.u32 %v891_v8, %v890_v32 }
 0x129   : > { %v913_v47 = vadd.f32 -0.33333147, %v912_v37 }
 0x12a   : > { %v940_v13 = vmul.f32 6371.0, %v892_v39 }
 0x12b   : > { %v914_v4 = vmul.f32 %v913_v47, %v899_v48 }
 0x12c   : > { %v942_v43 = vmul.f32 %v940_v13, %v940_v13 }
 0x12d   : > { %v915_v15 = vmul.f32 %v914_v4, %v898_v34 }
 0x12f   : > { %v916_v6 = vadd.f32 %v915_v15, %v898_v34 }
 0x131   : > { %v918_v46 = vsub.f32 1.5707964, %v916_v6 }
 0x133   : > { %v919_v28 = vsel %vm917_vm12, %v918_v46, %v916_v6 }
 0x134   : > { %v921_v62 = vsub.f32 3.1415927, %v919_v28 }
 0x136   : > { %v922_v19 = vsel %vm920_vm3, %v921_v62, %v919_v28 }
 0x137   : > { %v926_v3 = vsel %vm925_vm1, %v924_v41, %v922_v19 }
 0x138   : > { %v930_v5 = vsel %vm929_vm2, nan, %v926_v3 }
 0x139   : > { %v936_v44 = vsel %vm935_vm5, %v932_v11, %v930_v5 }
 0x13a   : > { %v937_v56 = vand.u32 2147483647, %v936_v44 }
 0x13c   : > { %v939_v16 = vor.u32 %v938_v50, %v937_v56 }
 0x13e   : > { %v941_v0 = vmul.f32 6371.0, %v939_v16 }
 0x140   : > { %v943_v23 = vmul.f32 %v941_v0, %v941_v0 }
 0x142   : > { %v944_v35 = vadd.f32 %v943_v23, %v942_v43 }
 0x144   : > { %945 = vst [vmem:[%s159_s20] sm:$0xff] %v944_v35 }
 0x145   : > { %1207 = shalt.err (!%p1204_p7)
}
 0x146   : > { %s1208_s5 = scalar_lea.hbm %s1959_s29, 128  ;;  %s1212_s14 = scalar_lea.hbm %s2004_s1, 256 }
 0x147   : > { %p1209_p8 = scmp.ne.s32.totalorder %s1959_s29, %s1208_s5  ;;  %p1213_p0 = scmp.lt.u32.totalorder %s1959_s29, %s2004_s1 }
 0x148   : > { %p1214_p1 = scmp.lt.u32.totalorder %s1212_s14, %s1208_s5  ;;  %p1216_p3 = scmp.lt.u32.totalorder %s1208_s5, %s1959_s29 }
 0x149   : > { %p1210_p12 = pnand %p1209_p8, %p1335_p9 }
 0x14a   : > { %p1215_p2 = por %p1214_p1, %p1213_p0 }
 0x14b   : > { %p1211_p13 = pneg %p1210_p12 }
 0x14c   : > { %p1217_p4 = por %p1216_p3, %p1215_p2 }
 0x14e   : > { %p1218_p5 = pnand %p1217_p4, %p1211_p13 }
 0x150   : > { %1221 = shalt.err (!%p1218_p5)
}
 0x151   : > { %1109 = dma.vmem_to_hbm [thread:$0]  (%p1335_p9), %s1961_s25, 128, %s1959_s29, %s947_s30  }
 0x152 PF: > { %s972_s23 = sand.u32 1, %s1248_s6   ;;  %p1112_p6 = pnand %p1032_p11, %p1339_p10 }
 0x153   : > { %s973_s24 = scalar_lea.sflag [#allocation4], %s972_s23 }
 0x154   : > { %1243 = dma.done.wait (!%p1112_p6), %s973_s24, 128  }
 0x155   : > { %1245 = vsyncadd (!%p1112_p6), %s973_s24, 4294967168  ;;  %p14_p7 = scmp.ge.s32.totalorder %s1312_s12, 4   ;;  %s2021_s6 = smov %s1252_s7 }
 0x156   : > { %s2022_s7 = smov %s1256_s8  ;;  %s2023_s8 = smov %s1324_s15 }
 0x157   : > { %s2024_s9 = smov %s1312_s12  ;;  %16 = sbr.rel (!%p14_p7) target bundleno = 5 (0x5), region = 77 }
 0x15e   :  { %978 = vsyncpa [#allocation3], 1 }
 0x15f   :  { %980 = vsyncpa [#allocation3 + $0x1], 1 }
 0x160   :  { %981 = vsyncpa [#allocation4], 1 }
 0x161   :  { %983 = vsyncpa [#allocation4 + $0x1], 1 }

</bundles_post_ra>
